<compile_context>
chip_gen: v7x
topology: tpu7x:2x2x1
jax: 0.10.0
libtpu: 0.0.40
codegen_flags: <defaults>
</compile_context>

<pallas_src>
import jax
import jax.numpy as jnp
import numpy as np
from jax.experimental import pallas as pl
from jax.experimental.pallas import tpu as pltpu


# ----------------------------------------------------------------------------
# Kernel A: masked prototype pooling on the MXU.
#   masked_sum[b] = mask_row[b] @ s_f[b]     ([1, SN_tile] x [SN_tile, D] -> [1, D])
# accumulated across SN tiles directly in the (VMEM-resident) f32 output block.
# ----------------------------------------------------------------------------
def _masked_sum_kernel(mask_ref, sf_ref, out_ref):
    k = pl.program_id(1)

    @pl.when(k == 0)
    def _init():
        out_ref[...] = jnp.zeros_like(out_ref)

    out_ref[0] += jnp.dot(mask_ref[0], sf_ref[0],
                          preferred_element_type=jnp.float32)


def _pick_sn_tile(SN, D, max_bytes=4 << 20):
    """Largest SN tile (multiple of 128, dividing SN) with <= max_bytes per s_f block."""
    if SN * D * 4 <= max_bytes:
        return SN
    t = ((max_bytes // (D * 4)) // 128) * 128
    t = max(t, 128)
    while t > 128 and SN % t != 0:
        t -= 128
    return t if SN % t == 0 else SN


def masked_prototype_sum(s_f_b, mask_row):
    """s_f_b: [B, SN, D] f32; mask_row: [B, 1, SN] f32 (lane-dense). -> [B, D] f32."""
    B, SN, D = s_f_b.shape
    tsn = _pick_sn_tile(SN, D)
    out = pl.pallas_call(
        _masked_sum_kernel,
        out_shape=jax.ShapeDtypeStruct((B, 1, D), jnp.float32),
        grid=(B, SN // tsn),
        in_specs=[
            pl.BlockSpec((1, 1, tsn), lambda b, k: (b, 0, k)),
            pl.BlockSpec((1, tsn, D), lambda b, k: (b, k, 0)),
        ],
        out_specs=pl.BlockSpec((1, 1, D), lambda b, k: (b, 0, 0)),
        compiler_params=pltpu.CompilerParams(
            dimension_semantics=("parallel", "arbitrary")),
    )(mask_row, s_f_b)
    return out.reshape(B, D)


# ----------------------------------------------------------------------------
# Kernel B (Gt images per grid step):
#   sim  = <feat, proto_scaled> * rsqrt(sum(feat^2))        (proto pre-scaled by
#                                                             sqrt(D)*sign, unit-norm)
#   enh  = (relu6(sim) + 1) * feat
#   out  = relu(enh @ W_down + b_down) @ W_up + b_up
# The normalized feature map is never materialized; rsqrt goes to the EUP slot.
# Matmul operands may be cast to bf16 (v6e/v7x fast path) with f32 accumulation.
# ----------------------------------------------------------------------------
def _make_enhance_mlp_kernel(mxu_dtype):
    def kernel(feat_ref, proto_ref, wd_ref, bd_ref, wu_ref, bu_ref, out_ref):
        feat = feat_ref[...]                                   # [Gt, N, D] f32
        proto = proto_ref[...]                                 # [Gt, 1, D] f32

        dotp = jnp.sum(feat * proto, axis=-1, keepdims=True)   # [Gt, N, 1]
        sumsq = jnp.sum(feat * feat, axis=-1, keepdims=True)   # [Gt, N, 1]
        sim = dotp * jax.lax.rsqrt(jnp.maximum(sumsq, 1e-24))
        gate = jnp.clip(sim, 0.0, 6.0) + 1.0                   # ReLU6(sim) + 1
        enh = (gate * feat).reshape(-1, feat.shape[-1])        # [Gt*N, D]

        h = jnp.dot(enh.astype(mxu_dtype), wd_ref[...],
                    preferred_element_type=jnp.float32) + bd_ref[...]
        h = jnp.maximum(h, 0.0)
        out = jnp.dot(h.astype(mxu_dtype), wu_ref[...],
                      preferred_element_type=jnp.float32) + bu_ref[...]
        out_ref[...] = out.reshape(out_ref.shape).astype(out_ref.dtype)
    return kernel


def _pick_g_tile(G, N, max_rows=512):
    """Largest divisor of G with Gt*N <= max_rows that still leaves >=2 grid steps."""
    best = 1
    for g in range(1, G + 1):
        if G % g == 0 and g * N <= max_rows and G // g >= 2:
            best = g
    return best


def enhance_and_project(feats, proto_scaled_per_img, w_down, b_down, w_up, b_up,
                        mxu_dtype=jnp.float32):
    G, N, D = feats.shape
    Dl = w_down.shape[1]
    Gt = _pick_g_tile(G, N)

    proto3 = proto_scaled_per_img.reshape(G, 1, D).astype(jnp.float32)
    wd = w_down.astype(mxu_dtype)                   # bf16 on v6e/v7x halves weight DMA
    wu = w_up.astype(mxu_dtype)
    bd = b_down.reshape(1, Dl).astype(jnp.float32)
    bu = b_up.reshape(1, D).astype(jnp.float32)

    return pl.pallas_call(
        _make_enhance_mlp_kernel(mxu_dtype),
        out_shape=jax.ShapeDtypeStruct((G, N, D), jnp.float32),
        grid=(G // Gt,),
        in_specs=[
            pl.BlockSpec((Gt, N, D), lambda g: (g, 0, 0)),
            pl.BlockSpec((Gt, 1, D), lambda g: (g, 0, 0)),
            pl.BlockSpec((D, Dl), lambda g: (0, 0)),   # weights resident (constant map)
            pl.BlockSpec((1, Dl), lambda g: (0, 0)),
            pl.BlockSpec((Dl, D), lambda g: (0, 0)),
            pl.BlockSpec((1, D), lambda g: (0, 0)),
        ],
        out_specs=pl.BlockSpec((Gt, N, D), lambda g: (g, 0, 0)),
        compiler_params=pltpu.CompilerParams(
            dimension_semantics=("parallel",)),
    )(feats, proto3, wd, bd, wu, bu)


# ----------------------------------------------------------------------------
# Full forward (glue: nearest-resize of mask, prototype-bank selection, concat)
# ----------------------------------------------------------------------------
def pam_forward(x, s_f, s_y, params, input_resolution, mxu_dtype=jnp.float32):
    B, N, D = x.shape
    S = s_f.shape[0] // B
    h, w = input_resolution
    Hin, Win = s_y.shape[-2:]

    # F.interpolate(mode='nearest') to (h, w); foreground mask lane-dense [B,1,S*N].
    idx_h = (jnp.arange(h) * Hin) // h
    idx_w = (jnp.arange(w) * Win) // w
    s_y_i = s_y[:, :, idx_h, :][:, :, :, idx_w]                  # [B, S, h, w]
    mask_row = (s_y_i == 1).astype(jnp.float32).reshape(B, 1, S * N)
    s_f_b = s_f.reshape(B, S * N, D)

    # Kernel A: MXU masked pooling; the tiny per-batch normalization stays in glue.
    masked_sum = masked_prototype_sum(s_f_b, mask_row)           # [B, D]
    cnt = jnp.sum(mask_row, axis=(1, 2))                         # [B] (mask is 0/1)
    semantic_proto = masked_sum / (cnt[:, None] + 1e-4)
    sign = jnp.where(cnt > 0.5, 1.0, cnt)                        # [B]

    # select_prototype_bank (eval path): tiny [B, C] matmul + argmax in glue.
    bank = params["prototype"]                                   # [D, C]
    bank_n = bank / jnp.maximum(jnp.linalg.norm(bank, axis=0, keepdims=True), 1e-12)
    sp_n = semantic_proto / jnp.maximum(
        jnp.linalg.norm(semantic_proto, axis=1, keepdims=True), 1e-12)
    idx = jnp.argmax(sp_n @ bank_n, axis=1)
    new_proto = jnp.take(bank_n, idx, axis=1).T                  # [B, D], unit-norm

    # Fold sqrt(D) * sign into the (already L2-normalized) prototype so Kernel B
    # needs no per-image scalar / lane-width-1 inputs.
    proto_scaled = new_proto * (float(D) ** 0.5 * sign)[:, None]  # [B, D]

    # Stack [support images ..., query images] in torch.cat order.
    feats = jnp.concatenate([s_f.reshape(B * S, N, D), x], axis=0)       # [G, N, D]
    bidx = jnp.concatenate([jnp.repeat(jnp.arange(B), S), jnp.arange(B)], axis=0)
    proto_per_img = proto_scaled[bidx]                           # [G, D]

    # Kernel B: enhancement + (linear_down -> ReLU -> linear_up); dropout(p=0) no-op.
    return enhance_and_project(feats, proto_per_img,
                               params["w_down"], params["b_down"],
                               params["w_up"], params["b_up"],
                               mxu_dtype=mxu_dtype)


# ----------------------------------------------------------------------------
# Pure-jnp reference mirroring the PyTorch forward (for correctness check)
# ----------------------------------------------------------------------------
def pam_ref(x, s_f, s_y, params, input_resolution):
    B, N, D = x.shape
    S = s_f.shape[0] // B
    h, w = input_resolution
    Hin, Win = s_y.shape[-2:]
    idx_h = (jnp.arange(h) * Hin) // h
    idx_w = (jnp.arange(w) * Win) // w
    s_y_i = s_y[:, :, idx_h, :][:, :, :, idx_w]
    mask = (s_y_i == 1).astype(jnp.float32).reshape(B, S * N, 1)
    s_fb = s_f.reshape(B, S * N, D)
    cnt = jnp.sum((mask.reshape(B, -1) != 0).astype(jnp.float32), axis=1)
    proto = jnp.mean(mask * s_fb, axis=1) * (N * S) / (cnt[:, None] + 1e-4)
    sign = jnp.where(cnt > 0.5, 1.0, cnt)

    bank = params["prototype"]
    bank_n = bank / jnp.maximum(jnp.linalg.norm(bank, axis=0, keepdims=True), 1e-12)
    sp_n = proto / jnp.maximum(jnp.linalg.norm(proto, axis=1, keepdims=True), 1e-12)
    sel = jnp.argmax(sp_n @ bank_n, axis=1)
    new_proto = bank_n[:, sel].T

    def enhance(feature):  # [B, S', N, D]
        f_n = feature / jnp.maximum(
            jnp.linalg.norm(feature, axis=-1, keepdims=True), 1e-12)
        p_n = new_proto / jnp.maximum(
            jnp.linalg.norm(new_proto, axis=1, keepdims=True), 1e-12)
        simm = jnp.einsum("bsnd,bd->bsn", f_n, p_n)
        simm = simm * (D ** 0.5) * sign[:, None, None]
        g = jnp.clip(simm, 0.0, 6.0)
        return g[..., None] * feature + feature

    enh_q = enhance(x[:, None])
    enh_s = enhance(s_f.reshape(B, S, N, D))
    reg = jnp.concatenate([enh_s.reshape(-1, N, D), enh_q[:, 0]], axis=0)
    hdn = jnp.maximum(reg @ params["w_down"] + params["b_down"], 0.0)
    return hdn @ params["w_up"] + params["b_up"]


if __name__ == "__main__":
    # Small shapes consistent with the module.
    B, S = 2, 1
    dim, hidden_ratio, class_num = 128, 16, 4
    h, w = 8, 8                      # input_resolution -> N = 64
    H, W = 16, 16                    # raw support-mask resolution
    N = h * w
    dim_low = dim // hidden_ratio

    key = jax.random.PRNGKey(0)
    kx, ks, ky, kp, k1, k2, k3, k4 = jax.random.split(key, 8)

    x = jax.random.normal(kx, (B, N, dim), jnp.float32)                 # query  [B, h*w, dim]
    s_f = jax.random.normal(ks, (B * S, N, dim), jnp.float32)           # support [B*S, h*w, dim]
    s_y = (jax.random.uniform(ky, (B, S, H, W)) > 0.5).astype(jnp.float32)

    # Deterministic synthetic parameters (shapes from __init__); no checkpoint load.
    proto_bank = jax.random.normal(kp, (dim, class_num), jnp.float32)
    proto_bank = proto_bank / jnp.maximum(
        jnp.linalg.norm(proto_bank, axis=0, keepdims=True), 1e-12)
    params = dict(
        prototype=proto_bank,                                              # [D, C]
        w_down=jax.random.normal(k1, (dim, dim_low), jnp.float32) * 0.02,  # Linear(dim, dim_low)
        b_down=jax.random.normal(k2, (1, dim_low), jnp.float32) * 0.02,
        w_up=jax.random.normal(k3, (dim_low, dim), jnp.float32) * 0.02,    # Linear(dim_low, dim)
        b_up=jax.random.normal(k4, (1, dim), jnp.float32) * 0.02,
    )

    ref = pam_ref(x, s_f, s_y, params, (h, w))

    # f32-at-the-MXU path (works on all chips): must match the reference tightly.
    out = jax.block_until_ready(pam_forward(x, s_f, s_y, params, (h, w)))
    assert out.shape == (B * (S + 1), N, dim)
    np.testing.assert_allclose(np.asarray(out), np.asarray(ref), rtol=2e-4, atol=2e-4)

    # bf16-at-the-MXU path (recommended on v6e/v7x): f32 accumulation, looser tol.
    out_bf16 = jax.block_until_ready(
        pam_forward(x, s_f, s_y, params, (h, w), mxu_dtype=jnp.bfloat16))
    np.testing.assert_allclose(np.asarray(out_bf16), np.asarray(ref),
                               rtol=3e-2, atol=5e-3)

    print("KERNEL_OK")
</pallas_src>

<mosaic_0001>
module attributes {stable_mosaic.version = 11 : i64} {
  func.func @_masked_sum_kernel(%arg0: i32, %arg1: i32, %arg2: memref<1x1x64xf32, #tpu.memory_space<vmem>>, %arg3: memref<1x64x128xf32, #tpu.memory_space<vmem>>, %arg4: memref<1x1x128xf32, #tpu.memory_space<vmem>>) attributes {dimension_semantics = [#tpu.dimension_semantics<parallel>, #tpu.dimension_semantics<arbitrary>], iteration_bounds = array<i64: 2, 1>, scalar_prefetch = 0 : i64, scratch_operands = 0 : i64, tpu.core_type = #tpu.core_type<tc>, window_params = [{transform_indices = @transform_0, window_bounds = array<i64: 1, 1, 64>}, {transform_indices = @transform_1, window_bounds = array<i64: 1, 64, 128>}, {transform_indices = @transform_2, window_bounds = array<i64: 1, 1, 128>}]} {
    %c0_i32 = arith.constant 0 : i32
    %0 = arith.cmpi eq, %arg1, %c0_i32 : i32
    %1 = arith.extui %0 : i1 to i32
    %c0_i32_0 = arith.constant 0 : i32
    %2 = arith.cmpi ne, %1, %c0_i32_0 : i32
    scf.if %2 {
      %cst_12 = arith.constant 0.000000e+00 : f32
      %14 = vector.broadcast %cst_12 : f32 to vector<1x1x128xf32>
      %c0_13 = arith.constant 0 : index
      %c0_14 = arith.constant 0 : index
      %c0_15 = arith.constant 0 : index
      %15 = vector.load %arg4[%c0_13, %c0_14, %c0_15] : memref<1x1x128xf32, #tpu.memory_space<vmem>>, vector<1x1x128xf32>
      tpu.vector_store %arg4[%c0_13, %c0_14, %c0_15], %14 {strides = array<i32>} : memref<1x1x128xf32, #tpu.memory_space<vmem>>, vector<1x1x128xf32>,
    } else {
    }
    %c0 = arith.constant 0 : index
    %c0_1 = arith.constant 0 : index
    %c0_2 = arith.constant 0 : index
    %3 = vector.load %arg4[%c0, %c0_1, %c0_2] : memref<1x1x128xf32, #tpu.memory_space<vmem>>, vector<1x1x128xf32>
    %4 = vector.shape_cast %3 : vector<1x1x128xf32> to vector<1x128xf32>
    %c0_3 = arith.constant 0 : index
    %c0_4 = arith.constant 0 : index
    %c0_5 = arith.constant 0 : index
    %5 = vector.load %arg2[%c0_3, %c0_4, %c0_5] : memref<1x1x64xf32, #tpu.memory_space<vmem>>, vector<1x1x64xf32>
    %6 = vector.shape_cast %5 : vector<1x1x64xf32> to vector<1x64xf32>
    %c0_6 = arith.constant 0 : index
    %c0_7 = arith.constant 0 : index
    %c0_8 = arith.constant 0 : index
    %7 = vector.load %arg3[%c0_6, %c0_7, %c0_8] : memref<1x64x128xf32, #tpu.memory_space<vmem>>, vector<1x64x128xf32>
    %8 = vector.shape_cast %7 : vector<1x64x128xf32> to vector<64x128xf32>
    %cst = arith.constant dense<0.000000e+00> : vector<1x128xf32>
    %9 = tpu.matmul %6, %8, %cst {dimension_numbers = #tpu.dot_dimension_numbers<[1], [0], [0], [1], [0, 0, 1, 1], [], []>} : vector<1x64xf32>, vector<64x128xf32>, vector<1x128xf32> -> vector<1x128xf32>
    %10 = arith.addf %4, %9 : vector<1x128xf32>
    %c0_9 = arith.constant 0 : index
    %c0_10 = arith.constant 0 : index
    %c0_11 = arith.constant 0 : index
    %11 = vector.load %arg4[%c0_9, %c0_10, %c0_11] : memref<1x1x128xf32, #tpu.memory_space<vmem>>, vector<1x1x128xf32>
    %12 = vector.shape_cast %11 : vector<1x1x128xf32> to vector<1x128xf32>
    %13 = vector.shape_cast %10 : vector<1x128xf32> to vector<1x1x128xf32>
    tpu.vector_store %arg4[%c0_9, %c0_10, %c0_11], %13 {strides = array<i32>} : memref<1x1x128xf32, #tpu.memory_space<vmem>>, vector<1x1x128xf32>,
    return
  }
  func.func @transform_0(%arg0: i32, %arg1: i32) -> (i32, i32, i32) {
    %c0_i32 = arith.constant 0 : i32
    %c0_i32_0 = arith.constant 0 : i32
    return %arg0, %c0_i32, %arg1 : i32, i32, i32
  }
  func.func @transform_1(%arg0: i32, %arg1: i32) -> (i32, i32, i32) {
    %c0_i32 = arith.constant 0 : i32
    %c0_i32_0 = arith.constant 0 : i32
    return %arg0, %arg1, %c0_i32 : i32, i32, i32
  }
  func.func @transform_2(%arg0: i32, %arg1: i32) -> (i32, i32, i32) {
    %c0_i32 = arith.constant 0 : i32
    %c0_i32_0 = arith.constant 0 : i32
    %c0_i32_1 = arith.constant 0 : i32
    return %arg0, %c0_i32, %c0_i32_0 : i32, i32, i32
  }
}

</mosaic_0001>

<bundles_post_ra>
// kernel: tpu_custom_call.1
= control target key start
LH: loop header
LB: loop body
LE: loop exit
PB: predicated region body
PF: predicated region fallthrough
CT: control target
= control target key end

     0   :  { %7 = vsyncpa [#allocation3], 0  ;;  %s949_s0 = inlined_call_operand.hbm [shape: f32[2,1,64], index: 0, kind: input, shape index: {}]   ;;  %s950_s1 = inlined_call_operand.hbm [shape: f32[2,64,128], index: 1, kind: input, shape index: {}]   ;;  %s951_s2 = inlined_call_operand.hbm [shape: f32[2,1,128], index: 2, kind: output, shape index: {}]  }
   0x1   :  { %9 = vsyncpa [#allocation3 + $0x1], 0 }
   0x2   :  { %10 = vsyncpa [#allocation6], 0 }
   0x3   :  { %12 = vsyncpa [#allocation6 + $0x1], 0 }
   0x4   :  { %13 = vsyncpa [#allocation4], 0 }
   0x5   :  { %15 = vsyncpa [#allocation4 + $0x1], 0  ;;  %s715_s9 = smov 0   ;;  %s717_s10 = smov 0  }
   0x6   :  { %s719_s11 = smov 0   ;;  %s721_s12 = smov 0  }
   0x7   :  { %s723_s13 = smov 0   ;;  %s725_s14 = smov 0  }
   0x8 LB: > { %s417_s15 = sadd.s32 4294967295, %s690_s14   ;;  %s418_s16 = sadd.s32 4294967294, %s690_s14   ;;  %s690_s14 = sphi %s725_s14, %s21_s14   ;;  %s686_s13 = sphi %s723_s13, %s970_s13   ;;  %s682_s12 = sphi %s721_s12, %s969_s12   ;;  %s678_s11 = sphi %s719_s11, %s968_s11   ;;  %s674_s10 = sphi %s717_s10, %s967_s10   ;;  %s670_s9 = sphi %s715_s9, %s966_s9  }
   0x9   : > { %s33_s17 = sadd.s32 1, %s686_s13  ;;  %s42_s18 = sadd.s32 1, %s678_s11 }
   0xa   : > { %p35_p0 = scmp.ge.s32.totalorder %s33_s17, 2  ;;  %p49_p1 = scmp.ne.s32.totalorder %s678_s11, %s674_s10 }
   0xb   : > { %p50_p2 = scmp.eq.s32.totalorder %s690_s14, 0  ;;  %p55_p3 = scmp.ne.s32.totalorder %s674_s10, %s670_s9 }
   0xc   : > { %s972_s17 = smov (%p35_p0, %s33_s17), 0  ;;  %p56_p5 = scmp.eq.s32.totalorder %s417_s15, 0 }
   0xd   : > { %p756_p4 = por %p50_p2, %p49_p1  ;;  %s37_s20 = ssub.s32 %s686_s13, %s972_s17 }
   0xe   : > { %p107_p6 = scmp.eq.s32.totalorder %s417_s15, 1  ;;  %p40_p7 = scmp.eq.s32.totalorder %s37_s20, 0 }
   0xf   : > { %p762_p8 = por %p56_p5, %p55_p3  ;;  %p113_p10 = scmp.eq.s32.totalorder %s418_s16, 1 }
  0x10   : > { %p766_p9 = por %p107_p6, %p49_p1  ;;  %p489_p13 = scmp.lt.s32.totalorder %s690_s14, 2 }
  0x11   : > { %s955_s21 = scalar_select %p762_p8, 1, 0 }
  0x12   : > { %s956_s22 = scalar_select %p766_p9, 1, 0 }
  0x13   : > { %s771_s23 = scalar_select %p40_p7, %s678_s11, %s42_s18  }
  0x14   : > { %p773_p11 = por %p113_p10, %p55_p3  ;;  %s780_s25 = sand.u32 1, %s678_s11  }
  0x15   : > { %s421_s26 = sshll.u32 %s686_s13, 4  ;;  %s136_s27 = scalar_lea.vmem [#allocation2], %s780_s25 }
  0x16   : > { %s957_s24 = scalar_select %p773_p11, 1, 0 }
  0x17   : > { %s144_s28 = sshll.u32 %s136_s27, 4  ;;  %s787_s3 = scalar_lea.hbm %s949_s0, %s421_s26  ;;  %s789_s28 = int_to_ptr.vmem [resolvable:$true] %s144_s28 }
  0x18   : > { %p793_p0 = pnand %p489_p13, %p756_p4  ;;  %s422_s5 = sshll.u32 %s780_s25, 6 }
  0x19   : > { %s134_s6 = scalar_lea.sflag [#allocation3], %s780_s25  ;;  %s544_s7 = scalar_lea.hbm %s787_s3, 16 }
  0x1a   : > { %p545_p3 = scmp.ne.s32.totalorder %s787_s3, %s544_s7  ;;  %p546_p5 = pneg %p793_p0 }
  0x1b   : > { %s549_s16 = scalar_lea.hbm %s949_s0, 32  ;;  %p550_p4 = scmp.lt.u32.totalorder %s787_s3, %s949_s0 }
  0x1c   : > { %p547_p6 = pnand %p546_p5, %p545_p3  ;;  %p551_p10 = scmp.lt.u32.totalorder %s549_s16, %s544_s7 }
  0x1d   : > { %p553_p12 = scmp.lt.u32.totalorder %s544_s7, %s787_s3 }
  0x1e   : > { %p548_p7 = pneg %p547_p6  ;;  %p552_p13 = por %p551_p10, %p550_p4 }
  0x20   : > { %p554_p1 = por %p553_p12, %p552_p13 }
  0x22   : > { %p555_p2 = pnand %p554_p1, %p548_p7 }
  0x24   : > { %558 = shalt.err (!%p555_p2)
}
  0x25   : > { %s559_s20 = scalar_lea.vmem %s789_s28, 16  ;;  %s692_s26 = smov [#allocation2]  }
  0x26   : > { %p560_p3 = scmp.ne.s32.totalorder %s789_s28, %s559_s20  ;;  %s564_s27 = sshll.u32 %s692_s26, 4  ;;  %s565_s27 = int_to_ptr.vmem [resolvable:$false] %s564_s27 }
  0x27   : > { %s566_s29 = scalar_lea.vmem %s565_s27, 32  ;;  %p567_p9 = scmp.lt.s32.totalorder %s789_s28, %s565_s27 }
  0x28   : > { %p562_p6 = pnand %p560_p3, %p546_p5  ;;  %p568_p4 = scmp.lt.s32.totalorder %s566_s29, %s559_s20 }
  0x2a   : > { %p563_p11 = pneg %p562_p6  ;;  %p569_p10 = por %p568_p4, %p567_p9 }
  0x2c   : > { %p570_p12 = pnand %p569_p10, %p563_p11 }
  0x2e   : > { %573 = shalt.err (!%p570_p12)
}
  0x2f   : > { %481 = dma.hbm_to_vmem [thread:$0]  (!%p793_p0), %s787_s3, 16, %s789_s28, %s134_s6  }
  0x30   : > { %p959_p1 = scmp.lt.s32.totalorder %s690_s14, 3  ;;  %p960_p2 = scmp.ge.s32.totalorder %s690_s14, 1 }
  0x31   : > { %s431_s7 = sshll.u32 %s686_s13, 10  ;;  %s155_s8 = scalar_lea.vmem [#allocation5], %s422_s5 }
  0x32   : > { %p830_p7 = pnand %p960_p2, %p959_p1  ;;  %s164_s15 = sshll.u32 %s155_s8, 4  ;;  %s842_s15 = int_to_ptr.vmem [resolvable:$true] %s164_s15 }
  0x33   : > { %s840_s19 = scalar_lea.hbm %s950_s1, %s431_s7  ;;  %s152_s28 = scalar_lea.sflag [#allocation6], %s780_s25 }
  0x34   : > { %s574_s3 = scalar_lea.hbm %s840_s19, 1024  ;;  %s579_s20 = scalar_lea.hbm %s950_s1, 2048 }
  0x35   : > { %p575_p9 = scmp.ne.s32.totalorder %s840_s19, %s574_s3  ;;  %p580_p3 = scmp.lt.u32.totalorder %s840_s19, %s950_s1 }
  0x36   : > { %p581_p6 = scmp.lt.u32.totalorder %s579_s20, %s574_s3  ;;  %p583_p10 = scmp.lt.u32.totalorder %s574_s3, %s840_s19 }
  0x37   : > { %p577_p11 = pnand %p575_p9, %p546_p5 }
  0x38   : > { %p582_p4 = por %p581_p6, %p580_p3 }
  0x39   : > { %p578_p13 = pneg %p577_p11 }
  0x3a   : > { %p584_p12 = por %p583_p10, %p582_p4 }
  0x3c   : > { %p585_p1 = pnand %p584_p12, %p578_p13 }
  0x3e   : > { %588 = shalt.err (!%p585_p1)
}
  0x3f   : > { %s589_s29 = scalar_lea.vmem %s842_s15, 1024  ;;  %s693_s7 = smov [#allocation5]  }
  0x40   : > { %p590_p2 = scmp.ne.s32.totalorder %s842_s15, %s589_s29  ;;  %s594_s8 = sshll.u32 %s693_s7, 4  ;;  %s595_s8 = int_to_ptr.vmem [resolvable:$false] %s594_s8 }
  0x41   : > { %s596_s16 = scalar_lea.vmem %s595_s8, 2048  ;;  %p597_p8 = scmp.lt.s32.totalorder %s842_s15, %s595_s8 }
  0x42   : > { %p592_p9 = pnand %p590_p2, %p546_p5  ;;  %p598_p3 = scmp.lt.s32.totalorder %s596_s16, %s589_s29 }
  0x44   : > { %p593_p11 = pneg %p592_p9  ;;  %p599_p6 = por %p598_p3, %p597_p8 }
  0x46   : > { %p600_p4 = pnand %p599_p6, %p593_p11 }
  0x48   : > { %603 = shalt.err (!%p600_p4)
}
  0x49   : > { %s694_s18 = smov 128   ;;  %s695_s3 = smov 8  }
  0x4a   : > { %484 = dma.hbm_to_vmem [thread:$0]  (!%p793_p0), %s840_s19, 1024, %s842_s15, %s152_s28, %s694_s18, %s694_s18, %s695_s3  }
  0x4b   : > { %176 = sbr.rel (%p830_p7) target bundleno = 333 (0x14d), region = 28  ;;  %s873_s5 = sand.u32 (!%p830_p7), 1, %s674_s10  }
  0x4c   : > { %s179_s6 = scalar_lea.sflag (!%p830_p7), [#allocation3], %s873_s5  ;;  %s181_s20 = scalar_lea.vmem (!%p830_p7), [#allocation2], %s873_s5 }
  0x4d   : > { %p962_p8 = scmp.ne.s32.totalorder (!%p830_p7), %s955_s21, 0 }
  0x52   : > { %657 = dma.done.wait (%p962_p8), %s179_s6, 16  }
  0x53   : > { %659 = vsyncadd (%p962_p8), %s179_s6, 4294967280  ;;  %s426_s25 = sshll.u32 %s873_s5, 6  ;;  %s187_s4 = scalar_lea.sflag [#allocation6], %s873_s5 }
  0x54   : > { %s190_s30 = scalar_lea.vmem [#allocation5], %s426_s25 }
  0x55   : > { %661 = dma.done.wait (%p962_p8), %s187_s4, 1024  }
  0x56   : > { %663 = vsyncadd (%p962_p8), %s187_s4, 4294966272  ;;  %v696_v0 = vmov 0.0|0.0   ;;  %s888_s15 = scalar_lea.vmem [#allocation7], %s873_s5  ;;  %v697_v1 = vmov 0.0   ;;  %vm698_vm0 = vmmov 0   ;;  %v222_v2 = vld [vmem:[%s190_s30] sm:$0xff] }
  0x57   : > { %460 = vmatprep.subr.bf16.mxu0 %v696_v0  ;;  %219 = vst [vmem:[%s888_s15] sm:$0x1] %v697_v1  ;;  %457 = vmatprep.mubr.msk.f32.mxu0 %vm698_vm0, %v697_v1  ;;  %v223_v3 = vld [vmem:[%s190_s30 + $0x8] sm:$0xff]  ;;  %v224_v4 = vld [vmem:[%s190_s30 + $0x10] sm:$0xff]  ;;  %v225_v6 = vld [vmem:[%s190_s30 + $0x18] sm:$0xff]  ;;  %vm230_vm1 = vcmask 523264   ;;  %s428_s21 = sshll.u32 %s682_s12, 4 }
  0x58   : > { %v461_v5 = vpack.c.bf16 %v223_v3, %v222_v2  ;;  %v464_v7 = vpack.c.bf16 %v225_v6, %v224_v4  ;;  %v226_v8 = vld [vmem:[%s190_s30 + $0x20] sm:$0xff]  ;;  %v227_v9 = vld [vmem:[%s190_s30 + $0x28] sm:$0xff]  ;;  %v228_v11 = vld [vmem:[%s190_s30 + $0x30] sm:$0xff]  ;;  %s319_s19 = sshll.u32 %s888_s15, 4  ;;  %s899_s27 = scalar_lea.hbm %s951_s2, %s428_s21  ;;  %s901_s19 = int_to_ptr.vmem [resolvable:$true] %s319_s19 }
  0x59   : > { %v467_v10 = vpack.c.bf16 %v227_v9, %v226_v8  ;;  %v229_v12 = vld [vmem:[%s190_s30 + $0x38] sm:$0xff]  ;;  %s307_s29 = scalar_lea.sflag [#allocation4], %s873_s5  ;;  %s604_s7 = scalar_lea.vmem %s901_s19, 16 }
  0x5a   : > { %462 = vmatpush3.bf16.msra.mxu0 %v461_v5  ;;  %v470_v13 = vpack.c.bf16 %v229_v12, %v228_v11  ;;  %v221_v14 = vld [vmem:[%s181_s20] sm:$0x1]  ;;  %p605_p0 = scmp.ne.s32.totalorder %s901_s19, %s604_s7  ;;  %p963_p5 = scmp.ne.s32.totalorder %s956_s22, 0 }
  0x5b   : > { %463 = vmatprep.subr.bf16.mxu0 %v696_v0  ;;  %s699_s12 = smov [#allocation7]  }
  0x5c   : > { %p606_p7 = pnand %p605_p0, %p963_p5  ;;  %s608_s8 = sshll.u32 %s699_s12, 4  ;;  %s609_s8 = int_to_ptr.vmem [resolvable:$false] %s608_s8 }
  0x5d   : > { %s610_s16 = scalar_lea.vmem %s609_s8, 32  ;;  %p611_p10 = scmp.lt.s32.totalorder %s901_s19, %s609_s8 }
  0x5e   : > { %465 = vmatpush3.bf16.msra.mxu0 %v464_v7  ;;  %v220_v15 = vld [vmem:[%s888_s15] sm:$0x1]  ;;  %p607_p13 = pneg %p606_p7  ;;  %p612_p12 = scmp.lt.s32.totalorder %s610_s16, %s604_s7 }
  0x5f   : > { %466 = vmatprep.subr.bf16.mxu0 %v696_v0 }
  0x60   : > { %p613_p1 = por %p612_p12, %p611_p10 }
  0x62   : > { %468 = vmatpush3.bf16.msra.mxu0 %v467_v10  ;;  %p614_p2 = pnand %p613_p1, %p607_p13 }
  0x63   : > { %469 = vmatprep.subr.bf16.mxu0 %v696_v0 }
  0x66   : > { %471 = vmatpush3.bf16.msra.mxu0 %v470_v13 }
  0x69   : > { %458 = vmatmul.mubr.msk.f32.vlgmr.msra.gmra.mrb[0].mxu0 %vm230_vm1, %v221_v14 }
 0x13c   : > { %v300_v16 = vpop.f32.mrb[0].mxu0 }
 0x13d   : > { %v304_v17 = vadd.f32 %v300_v16, %v220_v15  ;;  %v459_v18 = vpop.f32.mrb[1].mxu0 }
 0x13f   : > { %305 = vst [vmem:[%s888_s15] sm:$0x1] %v304_v17 }
 0x140   : > { %617 = shalt.err (!%p614_p2)
}
 0x141   : > { %s618_s18 = scalar_lea.hbm %s899_s27, 16  ;;  %s622_s6 = scalar_lea.hbm %s951_s2, 32 }
 0x142   : > { %p619_p9 = scmp.ne.s32.totalorder %s899_s27, %s618_s18  ;;  %p623_p6 = scmp.lt.u32.totalorder %s899_s27, %s951_s2 }
 0x143   : > { %p624_p4 = scmp.lt.u32.totalorder %s622_s6, %s618_s18  ;;  %p626_p0 = scmp.lt.u32.totalorder %s618_s18, %s899_s27 }
 0x144   : > { %p620_p11 = pnand %p619_p9, %p963_p5 }
 0x145   : > { %p625_p8 = por %p624_p4, %p623_p6 }
 0x146   : > { %p621_p3 = pneg %p620_p11 }
 0x147   : > { %p627_p7 = por %p626_p0, %p625_p8 }
 0x149   : > { %p628_p13 = pnand %p627_p7, %p621_p3 }
 0x14b   : > { %631 = shalt.err (!%p628_p13)
}
 0x14c   : > { %476 = dma.vmem_to_hbm [thread:$0]  (%p963_p5), %s901_s19, 16, %s899_s27, %s307_s29  }
 0x14d PF: > { %s331_s4 = sand.u32 1, %s670_s9   ;;  %p964_p10 = scmp.ne.s32.totalorder %s957_s24, 0 }
 0x14e   : > { %p965_p12 = scmp.ge.s32.totalorder %s690_s14, 2  ;;  %s332_s30 = scalar_lea.sflag [#allocation4], %s331_s4 }
 0x150   : > { %p486_p1 = pnand %p965_p12, %p964_p10 }
 0x152   : > { %665 = dma.done.wait (!%p486_p1), %s332_s30, 16  }
 0x153   : > { %667 = vsyncadd (!%p486_p1), %s332_s30, 4294967280  ;;  %s21_s14 = sadd.s32 1, %s690_s14   ;;  %s966_s9 = smov %s674_s10 }
 0x154   : > { %p18_p2 = scmp.ge.s32.totalorder %s21_s14, 4   ;;  %s967_s10 = smov %s678_s11 }
 0x155   : > { %s968_s11 = smov %s771_s23  ;;  %s969_s12 = smov %s686_s13 }
 0x156   : > { %s970_s13 = smov %s972_s17  ;;  %20 = sbr.rel (!%p18_p2) target bundleno = 8 (0x8), region = 90 }
 0x15d   :  { %336 = vsyncpa [#allocation3], 1 }
 0x15e   :  { %338 = vsyncpa [#allocation3 + $0x1], 1 }
 0x15f   :  { %339 = vsyncpa [#allocation6], 1 }
 0x160   :  { %341 = vsyncpa [#allocation6 + $0x1], 1 }
 0x161   :  { %342 = vsyncpa [#allocation4], 1 }
 0x162   :  { %344 = vsyncpa [#allocation4 + $0x1], 1 }

</bundles_post_ra>
